<compile_context>
chip_gen: v7x
topology: tpu7x:2x2x1
jax: 0.10.0
libtpu: 0.0.40
codegen_flags: <defaults>
</compile_context>

<pallas_src>
from functools import partial

import jax
import jax.numpy as jnp
from jax import lax
from jax.experimental import pallas as pl
from jax.experimental.pallas import tpu as pltpu


def bilstm_tagger_kernel(emb2_ref,      # (S, 2E)   [emb_t | emb_{S-1-t}] per row
                         wih2_ref,      # (2E, 8H)  packed cols [i_f i_b f_f f_b o_f o_b g_f g_b]
                         whh_ref,       # (2H, 8H)  block-diagonal, same column layout
                         b_ref,         # (1, 8H)   packed bias (b_ih + b_hh per direction)
                         w12_ref,       # (2H, Tpad) fused proj1 @ proj2 weight (lane-dense)
                         b12_ref,       # (1, Tpad)  fused bias
                         out_ref,       # (S, Tpad)
                         xp_ref,        # scratch (S, 8H)  fused, pre-selected input projections
                         hcat_ref):     # scratch (S, 2H)  [h_fwd(t) | h_bwd(t)] per row
    S = emb2_ref.shape[0]
    H2 = whh_ref.shape[0]          # 2H
    H = H2 // 2

    # Fused input projection, both directions, all gates, timestep-select already baked into
    # the wih2 row layout: one (S,2E)x(2E,8H) MXU op. Row t = gate inputs for fwd step t and
    # bwd step S-1-t (bias folded in, g columns pre-scaled by 2).
    xp_ref[...] = jnp.dot(emb2_ref[...], wih2_ref[...],
                          preferred_element_type=jnp.float32) + b_ref[...]

    whh = whh_ref[...]

    h = jnp.zeros((1, H2), jnp.float32)      # [h_fwd | h_bwd]
    c = jnp.zeros((1, H2), jnp.float32)      # [c_fwd | c_bwd]

    # Fully unrolled fused recurrence: forward direction walks t, backward walks S-1-t.
    # TODO(synk): for real throughput, batch ~8 sequences into the sublane dim so h/c/gates
    # become (8,2H)/(8,8H) and add a leading "parallel" grid axis to use both v7x TensorCores.
    # TODO(synk): with M=1 a VPU (broadcast+sublane-reduce) recurrence may beat the MXU matmul
    # on v5e/v6e; keep the MXU form here and revisit once measured / once batching lands.
    for t in range(S):
        gates = xp_ref[pl.ds(t, 1), :] + jnp.dot(h, whh,
                                                 preferred_element_type=jnp.float32)  # (1, 8H)

        # Single full-width EUP pass; g block recovered via tanh(x) = 2*sigmoid(2x) - 1
        # (its weight/bias columns were pre-scaled by 2 at prepack time).
        sig = jax.nn.sigmoid(gates)
        i_g = sig[:, 0:H2]                       # (1, 2H) : [fwd | bwd]
        f_g = sig[:, H2:2 * H2]
        o_g = sig[:, 2 * H2:3 * H2]
        g_g = 2.0 * sig[:, 3 * H2:4 * H2] - 1.0  # == tanh of the unscaled pre-activation

        c = f_g * c + i_g * g_g
        h = o_g * jnp.tanh(c)

        hcat_ref[pl.ds(t, 1), pl.ds(0, H)] = h[:, 0:H]           # forward hidden -> row t
        hcat_ref[pl.ds(S - 1 - t, 1), pl.ds(H, H)] = h[:, H:H2]  # backward hidden -> row S-1-t

    # Fused proj1+proj2 epilogue: one (S,2H)x(2H,Tpad) matmul into a lane-dense output.
    out_ref[...] = jnp.dot(hcat_ref[...], w12_ref[...],
                           preferred_element_type=jnp.float32) + b12_ref[...]


def prepack_params(wihf, whhf, bf, wihb, whhb, bb, w1, b1, w2, b2):
    """One-time (weight-load time) repacking. Pure layout + the exact proj1@proj2 fusion.

    LSTM weights are stored (in, out) with PyTorch gate column order i, f, g, o; biases are
    pre-summed b_ih + b_hh. Returns (wih2, whh, b, w12, b12).
    """
    E = wihf.shape[0]
    H = whhf.shape[0]
    M, T = w2.shape
    Tpad = max(128, ((T + 127) // 128) * 128)

    def gate(w, gi):                 # column block gi of a (*, 4H) tensor
        return w[:, gi * H:(gi + 1) * H]

    order = (0, 1, 3, 2)             # repack to i, f, o, g (PyTorch order is i, f, g, o)
    ZE = jnp.zeros((E, H), jnp.float32)
    ZH = jnp.zeros((H, H), jnp.float32)

    wih_cols, b_cols, whh_cols = [], [], []
    for gi in order:
        s = 2.0 if gi == 2 else 1.0  # pre-scale the g gate by 2 for the tanh-as-sigmoid trick
        # wih2: rows 0:E feed forward-direction lanes (multiplied by emb[t]),
        #       rows E:2E feed backward-direction lanes (multiplied by emb[S-1-t]).
        wih_cols.append(jnp.concatenate([s * gate(wihf, gi), ZE], axis=0))
        wih_cols.append(jnp.concatenate([ZE, s * gate(wihb, gi)], axis=0))
        b_cols += [s * gate(bf, gi), s * gate(bb, gi)]
        # block-diagonal recurrent weight: fwd rows feed fwd cols, bwd rows feed bwd cols.
        whh_cols.append(jnp.concatenate([s * gate(whhf, gi), ZH], axis=0))
        whh_cols.append(jnp.concatenate([ZH, s * gate(whhb, gi)], axis=0))

    wih2 = jnp.concatenate(wih_cols, axis=1)     # (2E, 8H)
    b = jnp.concatenate(b_cols, axis=1)          # (1, 8H)
    whh = jnp.concatenate(whh_cols, axis=1)      # (2H, 8H)

    # Exact fusion of the two Linear layers (no nonlinearity between them in the module),
    # zero-padded to a lane-dense 128-wide output.
    w2p = jnp.zeros((M, Tpad), jnp.float32).at[:, :T].set(w2)
    b2p = jnp.zeros((1, Tpad), jnp.float32).at[:, :T].set(b2)
    w12 = w1 @ w2p                               # (2H, Tpad)
    b12 = b1 @ w2p + b2p                         # (1, Tpad)
    return wih2, whh, b, w12, b12


@partial(jax.jit, static_argnames=("ntags",))
def bilstm_tagger(emb, wih2, whh, b, w12, b12, *, ntags):
    """emb: (S, E) embedded tokens; remaining args come from prepack_params()."""
    S, E = emb.shape
    H8 = wih2.shape[1]
    H = H8 // 8
    Tpad = w12.shape[1]

    # Per-call glue: only a flip + concat (the timestep select is baked into wih2's rows).
    emb2 = jnp.concatenate([emb, emb[::-1, :]], axis=1)     # (S, 2E)

    vmem = pl.BlockSpec(memory_space=pltpu.MemorySpace.VMEM)
    out = pl.pallas_call(
        bilstm_tagger_kernel,
        out_shape=jax.ShapeDtypeStruct((S, Tpad), jnp.float32),
        in_specs=[vmem] * 6,
        out_specs=vmem,
        scratch_shapes=[
            pltpu.VMEM((S, H8), jnp.float32),      # fused, pre-selected input projections
            pltpu.VMEM((S, 2 * H), jnp.float32),   # concatenated hidden states [fwd | bwd]
        ],
    )(emb2, wih2, whh, b, w12, b12)
    return out[:, :ntags]


# ---------------- pure-JAX reference (for correctness check) ----------------
def ref_forward(emb, wihf, whhf, bf, wihb, whhb, bb, w1, b1, w2, b2):
    H = whhf.shape[0]

    def run_dir(wih, whh, b, reverse):
        xs = emb[::-1] if reverse else emb

        def step(carry, x):
            h, c = carry
            gates = x[None, :] @ wih + b + h @ whh
            i = jax.nn.sigmoid(gates[:, 0:H])
            f = jax.nn.sigmoid(gates[:, H:2 * H])
            g = jnp.tanh(gates[:, 2 * H:3 * H])
            o = jax.nn.sigmoid(gates[:, 3 * H:4 * H])
            c = f * c + i * g
            h = o * jnp.tanh(c)
            return (h, c), h[0]

        h0 = jnp.zeros((1, H), jnp.float32)
        _, hs = lax.scan(step, (h0, h0), xs)
        return hs[::-1] if reverse else hs

    hf = run_dir(wihf, whhf, bf, False)
    hb = run_dir(wihb, whhb, bb, True)
    hcat = jnp.concatenate([hf, hb], axis=-1)
    return (hcat @ w1 + b1) @ w2 + b2


if __name__ == "__main__":
    # Small shapes consistent with the module's forward.
    NWORDS = 100
    WEMBED = 32
    HIDDEN = 32
    MLP = 32
    NTAGS = 16
    SEQ = 8

    key = jax.random.PRNGKey(0)
    ks = jax.random.split(key, 12)

    def u(k, shape, scale):
        return jax.random.uniform(k, shape, jnp.float32, -scale, scale)

    s_lstm = 1.0 / jnp.sqrt(HIDDEN)
    s1 = 1.0 / jnp.sqrt(2 * HIDDEN)
    s2 = 1.0 / jnp.sqrt(MLP)

    emb_table = u(ks[0], (NWORDS, WEMBED), 1.0)
    # Forward-direction LSTM params (PyTorch gate order i,f,g,o; stored transposed).
    wihf = u(ks[1], (WEMBED, 4 * HIDDEN), s_lstm)
    whhf = u(ks[2], (HIDDEN, 4 * HIDDEN), s_lstm)
    bf = u(ks[3], (1, 4 * HIDDEN), s_lstm) + u(ks[4], (1, 4 * HIDDEN), s_lstm)  # b_ih + b_hh
    # Backward-direction LSTM params.
    wihb = u(ks[5], (WEMBED, 4 * HIDDEN), s_lstm)
    whhb = u(ks[6], (HIDDEN, 4 * HIDDEN), s_lstm)
    bb = u(ks[7], (1, 4 * HIDDEN), s_lstm) + u(ks[8], (1, 4 * HIDDEN), s_lstm)
    # Projection layers.
    w1 = u(ks[9], (2 * HIDDEN, MLP), s1)
    b1 = u(ks[10], (1, MLP), s1)
    w2 = u(ks[11], (MLP, NTAGS), s2)
    b2 = jnp.zeros((1, NTAGS), jnp.float32)

    # One-time weight repacking (hoisted out of the per-call path).
    packed = prepack_params(wihf, whhf, bf, wihb, whhb, bb, w1, b1, w2, b2)
    packed = jax.block_until_ready(packed)

    # Token ids (the PyTorch module takes a 1-D LongTensor of word indices).
    x = jax.random.randint(jax.random.PRNGKey(1), (SEQ,), 0, NWORDS, jnp.int32)

    # Embedding lookup is glue (gather) done in plain JAX; the BiLSTM + projections run
    # inside the Pallas kernel.
    emb = emb_table[x]   # (SEQ, WEMBED)

    out = bilstm_tagger(emb, *packed, ntags=NTAGS)
    out = jax.block_until_ready(out)

    ref = ref_forward(emb, wihf, whhf, bf, wihb, whhb, bb, w1, b1, w2, b2)
    assert out.shape == (SEQ, NTAGS)
    # Tolerance covers MXU default-precision rounding differences between the (exact)
    # pre-fused proj1@proj2 epilogue and the reference's two separate matmuls.
    assert jnp.allclose(out, ref, atol=2e-3, rtol=2e-3), "mismatch vs JAX reference"

    print("KERNEL_OK")
</pallas_src>

<mosaic_0001>
module attributes {stable_mosaic.version = 11 : i64} {
  func.func @bilstm_tagger_kernel(%arg0: memref<8x64xf32, #tpu.memory_space<vmem>>, %arg1: memref<64x256xf32, #tpu.memory_space<vmem>>, %arg2: memref<64x256xf32, #tpu.memory_space<vmem>>, %arg3: memref<1x256xf32, #tpu.memory_space<vmem>>, %arg4: memref<64x128xf32, #tpu.memory_space<vmem>>, %arg5: memref<1x128xf32, #tpu.memory_space<vmem>>, %arg6: memref<8x128xf32, #tpu.memory_space<vmem>>, %arg7: memref<8x256xf32, #tpu.memory_space<vmem>>, %arg8: memref<8x64xf32, #tpu.memory_space<vmem>>) attributes {dimension_semantics = [], scalar_prefetch = 0 : i64, scratch_operands = 2 : i64, tpu.core_type = #tpu.core_type<tc>} {
    %c0 = arith.constant 0 : index
    %c0_0 = arith.constant 0 : index
    %0 = vector.load %arg0[%c0, %c0_0] : memref<8x64xf32, #tpu.memory_space<vmem>>, vector<8x64xf32>
    %c0_1 = arith.constant 0 : index
    %c0_2 = arith.constant 0 : index
    %1 = vector.load %arg1[%c0_1, %c0_2] : memref<64x256xf32, #tpu.memory_space<vmem>>, vector<64x256xf32>
    %cst = arith.constant dense<0.000000e+00> : vector<8x256xf32>
    %2 = tpu.matmul %0, %1, %cst {dimension_numbers = #tpu.dot_dimension_numbers<[1], [0], [0], [1], [0, 0, 1, 1], [], []>} : vector<8x64xf32>, vector<64x256xf32>, vector<8x256xf32> -> vector<8x256xf32>
    %c0_3 = arith.constant 0 : index
    %c0_4 = arith.constant 0 : index
    %3 = vector.load %arg3[%c0_3, %c0_4] : memref<1x256xf32, #tpu.memory_space<vmem>>, vector<1x256xf32>
    %4 = vector.broadcast %3 : vector<1x256xf32> to vector<8x256xf32>
    %5 = arith.addf %2, %4 : vector<8x256xf32>
    %c0_5 = arith.constant 0 : index
    %c0_6 = arith.constant 0 : index
    %6 = vector.load %arg7[%c0_5, %c0_6] : memref<8x256xf32, #tpu.memory_space<vmem>>, vector<8x256xf32>
    tpu.vector_store %arg7[%c0_5, %c0_6], %5 {strides = array<i32>} : memref<8x256xf32, #tpu.memory_space<vmem>>, vector<8x256xf32>,
    %c0_7 = arith.constant 0 : index
    %c0_8 = arith.constant 0 : index
    %7 = vector.load %arg2[%c0_7, %c0_8] : memref<64x256xf32, #tpu.memory_space<vmem>>, vector<64x256xf32>
    %cst_9 = arith.constant 0.000000e+00 : f32
    %8 = vector.broadcast %cst_9 : f32 to vector<1x64xf32>
    %cst_10 = arith.constant 0.000000e+00 : f32
    %9 = vector.broadcast %cst_10 : f32 to vector<1x64xf32>
    %c0_11 = arith.constant 0 : index
    %c0_12 = arith.constant 0 : index
    %10 = vector.load %arg7[%c0_11, %c0_12] : memref<8x256xf32, #tpu.memory_space<vmem>>, vector<1x256xf32>
    %cst_13 = arith.constant dense<0.000000e+00> : vector<1x256xf32>
    %11 = tpu.matmul %8, %7, %cst_13 {dimension_numbers = #tpu.dot_dimension_numbers<[1], [0], [0], [1], [0, 0, 1, 1], [], []>} : vector<1x64xf32>, vector<64x256xf32>, vector<1x256xf32> -> vector<1x256xf32>
    %12 = arith.addf %10, %11 : vector<1x256xf32>
    %13 = arith.negf %12 : vector<1x256xf32>
    %14 = math.exp %13 : vector<1x256xf32>
    %cst_14 = arith.constant 1.000000e+00 : f32
    %15 = vector.broadcast %cst_14 : f32 to vector<1x256xf32>
    %16 = arith.addf %15, %14 : vector<1x256xf32>
    %17 = arith.divf %15, %16 : vector<1x256xf32>
    %18 = vector.extract_strided_slice %17 {offsets = [0, 0], sizes = [1, 64], strides = [1, 1]} : vector<1x256xf32> to vector<1x64xf32>
    %19 = vector.extract_strided_slice %17 {offsets = [0, 64], sizes = [1, 64], strides = [1, 1]} : vector<1x256xf32> to vector<1x64xf32>
    %20 = vector.extract_strided_slice %17 {offsets = [0, 128], sizes = [1, 64], strides = [1, 1]} : vector<1x256xf32> to vector<1x64xf32>
    %21 = vector.extract_strided_slice %17 {offsets = [0, 192], sizes = [1, 64], strides = [1, 1]} : vector<1x256xf32> to vector<1x64xf32>
    %cst_15 = arith.constant 2.000000e+00 : f32
    %22 = vector.broadcast %cst_15 : f32 to vector<1x64xf32>
    %23 = arith.mulf %22, %21 : vector<1x64xf32>
    %cst_16 = arith.constant 1.000000e+00 : f32
    %24 = vector.broadcast %cst_16 : f32 to vector<1x64xf32>
    %25 = arith.subf %23, %24 : vector<1x64xf32>
    %26 = arith.mulf %19, %9 : vector<1x64xf32>
    %27 = arith.mulf %18, %25 : vector<1x64xf32>
    %28 = arith.addf %26, %27 : vector<1x64xf32>
    %29 = math.tanh %28 : vector<1x64xf32>
    %30 = arith.mulf %20, %29 : vector<1x64xf32>
    %31 = vector.extract_strided_slice %30 {offsets = [0, 0], sizes = [1, 32], strides = [1, 1]} : vector<1x64xf32> to vector<1x32xf32>
    %c0_17 = arith.constant 0 : index
    %c0_18 = arith.constant 0 : index
    %32 = vector.load %arg8[%c0_17, %c0_18] : memref<8x64xf32, #tpu.memory_space<vmem>>, vector<1x32xf32>
    tpu.vector_store %arg8[%c0_17, %c0_18], %31 {strides = array<i32>} : memref<8x64xf32, #tpu.memory_space<vmem>>, vector<1x32xf32>,
    %33 = vector.extract_strided_slice %30 {offsets = [0, 32], sizes = [1, 32], strides = [1, 1]} : vector<1x64xf32> to vector<1x32xf32>
    %c7 = arith.constant 7 : index
    %c32 = arith.constant 32 : index
    %34 = vector.load %arg8[%c7, %c32] : memref<8x64xf32, #tpu.memory_space<vmem>>, vector<1x32xf32>
    tpu.vector_store %arg8[%c7, %c32], %33 {strides = array<i32>} : memref<8x64xf32, #tpu.memory_space<vmem>>, vector<1x32xf32>,
    %c1 = arith.constant 1 : index
    %c0_19 = arith.constant 0 : index
    %35 = vector.load %arg7[%c1, %c0_19] : memref<8x256xf32, #tpu.memory_space<vmem>>, vector<1x256xf32>
    %cst_20 = arith.constant dense<0.000000e+00> : vector<1x256xf32>
    %36 = tpu.matmul %30, %7, %cst_20 {dimension_numbers = #tpu.dot_dimension_numbers<[1], [0], [0], [1], [0, 0, 1, 1], [], []>} : vector<1x64xf32>, vector<64x256xf32>, vector<1x256xf32> -> vector<1x256xf32>
    %37 = arith.addf %35, %36 : vector<1x256xf32>
    %38 = arith.negf %37 : vector<1x256xf32>
    %39 = math.exp %38 : vector<1x256xf32>
    %cst_21 = arith.constant 1.000000e+00 : f32
    %40 = vector.broadcast %cst_21 : f32 to vector<1x256xf32>
    %41 = arith.addf %40, %39 : vector<1x256xf32>
    %42 = arith.divf %40, %41 : vector<1x256xf32>
    %43 = vector.extract_strided_slice %42 {offsets = [0, 0], sizes = [1, 64], strides = [1, 1]} : vector<1x256xf32> to vector<1x64xf32>
    %44 = vector.extract_strided_slice %42 {offsets = [0, 64], sizes = [1, 64], strides = [1, 1]} : vector<1x256xf32> to vector<1x64xf32>
    %45 = vector.extract_strided_slice %42 {offsets = [0, 128], sizes = [1, 64], strides = [1, 1]} : vector<1x256xf32> to vector<1x64xf32>
    %46 = vector.extract_strided_slice %42 {offsets = [0, 192], sizes = [1, 64], strides = [1, 1]} : vector<1x256xf32> to vector<1x64xf32>
    %cst_22 = arith.constant 2.000000e+00 : f32
    %47 = vector.broadcast %cst_22 : f32 to vector<1x64xf32>
    %48 = arith.mulf %47, %46 : vector<1x64xf32>
    %cst_23 = arith.constant 1.000000e+00 : f32
    %49 = vector.broadcast %cst_23 : f32 to vector<1x64xf32>
    %50 = arith.subf %48, %49 : vector<1x64xf32>
    %51 = arith.mulf %44, %28 : vector<1x64xf32>
    %52 = arith.mulf %43, %50 : vector<1x64xf32>
    %53 = arith.addf %51, %52 : vector<1x64xf32>
    %54 = math.tanh %53 : vector<1x64xf32>
    %55 = arith.mulf %45, %54 : vector<1x64xf32>
    %56 = vector.extract_strided_slice %55 {offsets = [0, 0], sizes = [1, 32], strides = [1, 1]} : vector<1x64xf32> to vector<1x32xf32>
    %c1_24 = arith.constant 1 : index
    %c0_25 = arith.constant 0 : index
    %57 = vector.load %arg8[%c1_24, %c0_25] : memref<8x64xf32, #tpu.memory_space<vmem>>, vector<1x32xf32>
    tpu.vector_store %arg8[%c1_24, %c0_25], %56 {strides = array<i32>} : memref<8x64xf32, #tpu.memory_space<vmem>>, vector<1x32xf32>,
    %58 = vector.extract_strided_slice %55 {offsets = [0, 32], sizes = [1, 32], strides = [1, 1]} : vector<1x64xf32> to vector<1x32xf32>
    %c6 = arith.constant 6 : index
    %c32_26 = arith.constant 32 : index
    %59 = vector.load %arg8[%c6, %c32_26] : memref<8x64xf32, #tpu.memory_space<vmem>>, vector<1x32xf32>
    tpu.vector_store %arg8[%c6, %c32_26], %58 {strides = array<i32>} : memref<8x64xf32, #tpu.memory_space<vmem>>, vector<1x32xf32>,
    %c2 = arith.constant 2 : index
    %c0_27 = arith.constant 0 : index
    %60 = vector.load %arg7[%c2, %c0_27] : memref<8x256xf32, #tpu.memory_space<vmem>>, vector<1x256xf32>
    %cst_28 = arith.constant dense<0.000000e+00> : vector<1x256xf32>
    %61 = tpu.matmul %55, %7, %cst_28 {dimension_numbers = #tpu.dot_dimension_numbers<[1], [0], [0], [1], [0, 0, 1, 1], [], []>} : vector<1x64xf32>, vector<64x256xf32>, vector<1x256xf32> -> vector<1x256xf32>
    %62 = arith.addf %60, %61 : vector<1x256xf32>
    %63 = arith.negf %62 : vector<1x256xf32>
    %64 = math.exp %63 : vector<1x256xf32>
    %cst_29 = arith.constant 1.000000e+00 : f32
    %65 = vector.broadcast %cst_29 : f32 to vector<1x256xf32>
    %66 = arith.addf %65, %64 : vector<1x256xf32>
    %67 = arith.divf %65, %66 : vector<1x256xf32>
    %68 = vector.extract_strided_slice %67 {offsets = [0, 0], sizes = [1, 64], strides = [1, 1]} : vector<1x256xf32> to vector<1x64xf32>
    %69 = vector.extract_strided_slice %67 {offsets = [0, 64], sizes = [1, 64], strides = [1, 1]} : vector<1x256xf32> to vector<1x64xf32>
    %70 = vector.extract_strided_slice %67 {offsets = [0, 128], sizes = [1, 64], strides = [1, 1]} : vector<1x256xf32> to vector<1x64xf32>
    %71 = vector.extract_strided_slice %67 {offsets = [0, 192], sizes = [1, 64], strides = [1, 1]} : vector<1x256xf32> to vector<1x64xf32>
    %cst_30 = arith.constant 2.000000e+00 : f32
    %72 = vector.broadcast %cst_30 : f32 to vector<1x64xf32>
    %73 = arith.mulf %72, %71 : vector<1x64xf32>
    %cst_31 = arith.constant 1.000000e+00 : f32
    %74 = vector.broadcast %cst_31 : f32 to vector<1x64xf32>
    %75 = arith.subf %73, %74 : vector<1x64xf32>
    %76 = arith.mulf %69, %53 : vector<1x64xf32>
    %77 = arith.mulf %68, %75 : vector<1x64xf32>
    %78 = arith.addf %76, %77 : vector<1x64xf32>
    %79 = math.tanh %78 : vector<1x64xf32>
    %80 = arith.mulf %70, %79 : vector<1x64xf32>
    %81 = vector.extract_strided_slice %80 {offsets = [0, 0], sizes = [1, 32], strides = [1, 1]} : vector<1x64xf32> to vector<1x32xf32>
    %c2_32 = arith.constant 2 : index
    %c0_33 = arith.constant 0 : index
    %82 = vector.load %arg8[%c2_32, %c0_33] : memref<8x64xf32, #tpu.memory_space<vmem>>, vector<1x32xf32>
    tpu.vector_store %arg8[%c2_32, %c0_33], %81 {strides = array<i32>} : memref<8x64xf32, #tpu.memory_space<vmem>>, vector<1x32xf32>,
    %83 = vector.extract_strided_slice %80 {offsets = [0, 32], sizes = [1, 32], strides = [1, 1]} : vector<1x64xf32> to vector<1x32xf32>
    %c5 = arith.constant 5 : index
    %c32_34 = arith.constant 32 : index
    %84 = vector.load %arg8[%c5, %c32_34] : memref<8x64xf32, #tpu.memory_space<vmem>>, vector<1x32xf32>
    tpu.vector_store %arg8[%c5, %c32_34], %83 {strides = array<i32>} : memref<8x64xf32, #tpu.memory_space<vmem>>, vector<1x32xf32>,
    %c3 = arith.constant 3 : index
    %c0_35 = arith.constant 0 : index
    %85 = vector.load %arg7[%c3, %c0_35] : memref<8x256xf32, #tpu.memory_space<vmem>>, vector<1x256xf32>
    %cst_36 = arith.constant dense<0.000000e+00> : vector<1x256xf32>
    %86 = tpu.matmul %80, %7, %cst_36 {dimension_numbers = #tpu.dot_dimension_numbers<[1], [0], [0], [1], [0, 0, 1, 1], [], []>} : vector<1x64xf32>, vector<64x256xf32>, vector<1x256xf32> -> vector<1x256xf32>
    %87 = arith.addf %85, %86 : vector<1x256xf32>
    %88 = arith.negf %87 : vector<1x256xf32>
    %89 = math.exp %88 : vector<1x256xf32>
    %cst_37 = arith.constant 1.000000e+00 : f32
    %90 = vector.broadcast %cst_37 : f32 to vector<1x256xf32>
    %91 = arith.addf %90, %89 : vector<1x256xf32>
    %92 = arith.divf %90, %91 : vector<1x256xf32>
    %93 = vector.extract_strided_slice %92 {offsets = [0, 0], sizes = [1, 64], strides = [1, 1]} : vector<1x256xf32> to vector<1x64xf32>
    %94 = vector.extract_strided_slice %92 {offsets = [0, 64], sizes = [1, 64], strides = [1, 1]} : vector<1x256xf32> to vector<1x64xf32>
    %95 = vector.extract_strided_slice %92 {offsets = [0, 128], sizes = [1, 64], strides = [1, 1]} : vector<1x256xf32> to vector<1x64xf32>
    %96 = vector.extract_strided_slice %92 {offsets = [0, 192], sizes = [1, 64], strides = [1, 1]} : vector<1x256xf32> to vector<1x64xf32>
    %cst_38 = arith.constant 2.000000e+00 : f32
    %97 = vector.broadcast %cst_38 : f32 to vector<1x64xf32>
    %98 = arith.mulf %97, %96 : vector<1x64xf32>
    %cst_39 = arith.constant 1.000000e+00 : f32
    %99 = vector.broadcast %cst_39 : f32 to vector<1x64xf32>
    %100 = arith.subf %98, %99 : vector<1x64xf32>
    %101 = arith.mulf %94, %78 : vector<1x64xf32>
    %102 = arith.mulf %93, %100 : vector<1x64xf32>
    %103 = arith.addf %101, %102 : vector<1x64xf32>
    %104 = math.tanh %103 : vector<1x64xf32>
    %105 = arith.mulf %95, %104 : vector<1x64xf32>
    %106 = vector.extract_strided_slice %105 {offsets = [0, 0], sizes = [1, 32], strides = [1, 1]} : vector<1x64xf32> to vector<1x32xf32>
    %c3_40 = arith.constant 3 : index
    %c0_41 = arith.constant 0 : index
    %107 = vector.load %arg8[%c3_40, %c0_41] : memref<8x64xf32, #tpu.memory_space<vmem>>, vector<1x32xf32>
    tpu.vector_store %arg8[%c3_40, %c0_41], %106 {strides = array<i32>} : memref<8x64xf32, #tpu.memory_space<vmem>>, vector<1x32xf32>,
    %108 = vector.extract_strided_slice %105 {offsets = [0, 32], sizes = [1, 32], strides = [1, 1]} : vector<1x64xf32> to vector<1x32xf32>
    %c4 = arith.constant 4 : index
    %c32_42 = arith.constant 32 : index
    %109 = vector.load %arg8[%c4, %c32_42] : memref<8x64xf32, #tpu.memory_space<vmem>>, vector<1x32xf32>
    tpu.vector_store %arg8[%c4, %c32_42], %108 {strides = array<i32>} : memref<8x64xf32, #tpu.memory_space<vmem>>, vector<1x32xf32>,
    %c4_43 = arith.constant 4 : index
    %c0_44 = arith.constant 0 : index
    %110 = vector.load %arg7[%c4_43, %c0_44] : memref<8x256xf32, #tpu.memory_space<vmem>>, vector<1x256xf32>
    %cst_45 = arith.constant dense<0.000000e+00> : vector<1x256xf32>
    %111 = tpu.matmul %105, %7, %cst_45 {dimension_numbers = #tpu.dot_dimension_numbers<[1], [0], [0], [1], [0, 0, 1, 1], [], []>} : vector<1x64xf32>, vector<64x256xf32>, vector<1x256xf32> -> vector<1x256xf32>
    %112 = arith.addf %110, %111 : vector<1x256xf32>
    %113 = arith.negf %112 : vector<1x256xf32>
    %114 = math.exp %113 : vector<1x256xf32>
    %cst_46 = arith.constant 1.000000e+00 : f32
    %115 = vector.broadcast %cst_46 : f32 to vector<1x256xf32>
    %116 = arith.addf %115, %114 : vector<1x256xf32>
    %117 = arith.divf %115, %116 : vector<1x256xf32>
    %118 = vector.extract_strided_slice %117 {offsets = [0, 0], sizes = [1, 64], strides = [1, 1]} : vector<1x256xf32> to vector<1x64xf32>
    %119 = vector.extract_strided_slice %117 {offsets = [0, 64], sizes = [1, 64], strides = [1, 1]} : vector<1x256xf32> to vector<1x64xf32>
    %120 = vector.extract_strided_slice %117 {offsets = [0, 128], sizes = [1, 64], strides = [1, 1]} : vector<1x256xf32> to vector<1x64xf32>
    %121 = vector.extract_strided_slice %117 {offsets = [0, 192], sizes = [1, 64], strides = [1, 1]} : vector<1x256xf32> to vector<1x64xf32>
    %cst_47 = arith.constant 2.000000e+00 : f32
    %122 = vector.broadcast %cst_47 : f32 to vector<1x64xf32>
    %123 = arith.mulf %122, %121 : vector<1x64xf32>
    %cst_48 = arith.constant 1.000000e+00 : f32
    %124 = vector.broadcast %cst_48 : f32 to vector<1x64xf32>
    %125 = arith.subf %123, %124 : vector<1x64xf32>
    %126 = arith.mulf %119, %103 : vector<1x64xf32>
    %127 = arith.mulf %118, %125 : vector<1x64xf32>
    %128 = arith.addf %126, %127 : vector<1x64xf32>
    %129 = math.tanh %128 : vector<1x64xf32>
    %130 = arith.mulf %120, %129 : vector<1x64xf32>
    %131 = vector.extract_strided_slice %130 {offsets = [0, 0], sizes = [1, 32], strides = [1, 1]} : vector<1x64xf32> to vector<1x32xf32>
    %c4_49 = arith.constant 4 : index
    %c0_50 = arith.constant 0 : index
    %132 = vector.load %arg8[%c4_49, %c0_50] : memref<8x64xf32, #tpu.memory_space<vmem>>, vector<1x32xf32>
    tpu.vector_store %arg8[%c4_49, %c0_50], %131 {strides = array<i32>} : memref<8x64xf32, #tpu.memory_space<vmem>>, vector<1x32xf32>,
    %133 = vector.extract_strided_slice %130 {offsets = [0, 32], sizes = [1, 32], strides = [1, 1]} : vector<1x64xf32> to vector<1x32xf32>
    %c3_51 = arith.constant 3 : index
    %c32_52 = arith.constant 32 : index
    %134 = vector.load %arg8[%c3_51, %c32_52] : memref<8x64xf32, #tpu.memory_space<vmem>>, vector<1x32xf32>
    tpu.vector_store %arg8[%c3_51, %c32_52], %133 {strides = array<i32>} : memref<8x64xf32, #tpu.memory_space<vmem>>, vector<1x32xf32>,
    %c5_53 = arith.constant 5 : index
    %c0_54 = arith.constant 0 : index
    %135 = vector.load %arg7[%c5_53, %c0_54] : memref<8x256xf32, #tpu.memory_space<vmem>>, vector<1x256xf32>
    %cst_55 = arith.constant dense<0.000000e+00> : vector<1x256xf32>
    %136 = tpu.matmul %130, %7, %cst_55 {dimension_numbers = #tpu.dot_dimension_numbers<[1], [0], [0], [1], [0, 0, 1, 1], [], []>} : vector<1x64xf32>, vector<64x256xf32>, vector<1x256xf32> -> vector<1x256xf32>
    %137 = arith.addf %135, %136 : vector<1x256xf32>
    %138 = arith.negf %137 : vector<1x256xf32>
    %139 = math.exp %138 : vector<1x256xf32>
    %cst_56 = arith.constant 1.000000e+00 : f32
    %140 = vector.broadcast %cst_56 : f32 to vector<1x256xf32>
    %141 = arith.addf %140, %139 : vector<1x256xf32>
    %142 = arith.divf %140, %141 : vector<1x256xf32>
    %143 = vector.extract_strided_slice %142 {offsets = [0, 0], sizes = [1, 64], strides = [1, 1]} : vector<1x256xf32> to vector<1x64xf32>
    %144 = vector.extract_strided_slice %142 {offsets = [0, 64], sizes = [1, 64], strides = [1, 1]} : vector<1x256xf32> to vector<1x64xf32>
    %145 = vector.extract_strided_slice %142 {offsets = [0, 128], sizes = [1, 64], strides = [1, 1]} : vector<1x256xf32> to vector<1x64xf32>
    %146 = vector.extract_strided_slice %142 {offsets = [0, 192], sizes = [1, 64], strides = [1, 1]} : vector<1x256xf32> to vector<1x64xf32>
    %cst_57 = arith.constant 2.000000e+00 : f32
    %147 = vector.broadcast %cst_57 : f32 to vector<1x64xf32>
    %148 = arith.mulf %147, %146 : vector<1x64xf32>
    %cst_58 = arith.constant 1.000000e+00 : f32
    %149 = vector.broadcast %cst_58 : f32 to vector<1x64xf32>
    %150 = arith.subf %148, %149 : vector<1x64xf32>
    %151 = arith.mulf %144, %128 : vector<1x64xf32>
    %152 = arith.mulf %143, %150 : vector<1x64xf32>
    %153 = arith.addf %151, %152 : vector<1x64xf32>
    %154 = math.tanh %153 : vector<1x64xf32>
    %155 = arith.mulf %145, %154 : vector<1x64xf32>
    %156 = vector.extract_strided_slice %155 {offsets = [0, 0], sizes = [1, 32], strides = [1, 1]} : vector<1x64xf32> to vector<1x32xf32>
    %c5_59 = arith.constant 5 : index
    %c0_60 = arith.constant 0 : index
    %157 = vector.load %arg8[%c5_59, %c0_60] : memref<8x64xf32, #tpu.memory_space<vmem>>, vector<1x32xf32>
    tpu.vector_store %arg8[%c5_59, %c0_60], %156 {strides = array<i32>} : memref<8x64xf32, #tpu.memory_space<vmem>>, vector<1x32xf32>,
    %158 = vector.extract_strided_slice %155 {offsets = [0, 32], sizes = [1, 32], strides = [1, 1]} : vector<1x64xf32> to vector<1x32xf32>
    %c2_61 = arith.constant 2 : index
    %c32_62 = arith.constant 32 : index
    %159 = vector.load %arg8[%c2_61, %c32_62] : memref<8x64xf32, #tpu.memory_space<vmem>>, vector<1x32xf32>
    tpu.vector_store %arg8[%c2_61, %c32_62], %158 {strides = array<i32>} : memref<8x64xf32, #tpu.memory_space<vmem>>, vector<1x32xf32>,
    %c6_63 = arith.constant 6 : index
    %c0_64 = arith.constant 0 : index
    %160 = vector.load %arg7[%c6_63, %c0_64] : memref<8x256xf32, #tpu.memory_space<vmem>>, vector<1x256xf32>
    %cst_65 = arith.constant dense<0.000000e+00> : vector<1x256xf32>
    %161 = tpu.matmul %155, %7, %cst_65 {dimension_numbers = #tpu.dot_dimension_numbers<[1], [0], [0], [1], [0, 0, 1, 1], [], []>} : vector<1x64xf32>, vector<64x256xf32>, vector<1x256xf32> -> vector<1x256xf32>
    %162 = arith.addf %160, %161 : vector<1x256xf32>
    %163 = arith.negf %162 : vector<1x256xf32>
    %164 = math.exp %163 : vector<1x256xf32>
    %cst_66 = arith.constant 1.000000e+00 : f32
    %165 = vector.broadcast %cst_66 : f32 to vector<1x256xf32>
    %166 = arith.addf %165, %164 : vector<1x256xf32>
    %167 = arith.divf %165, %166 : vector<1x256xf32>
    %168 = vector.extract_strided_slice %167 {offsets = [0, 0], sizes = [1, 64], strides = [1, 1]} : vector<1x256xf32> to vector<1x64xf32>
    %169 = vector.extract_strided_slice %167 {offsets = [0, 64], sizes = [1, 64], strides = [1, 1]} : vector<1x256xf32> to vector<1x64xf32>
    %170 = vector.extract_strided_slice %167 {offsets = [0, 128], sizes = [1, 64], strides = [1, 1]} : vector<1x256xf32> to vector<1x64xf32>
    %171 = vector.extract_strided_slice %167 {offsets = [0, 192], sizes = [1, 64], strides = [1, 1]} : vector<1x256xf32> to vector<1x64xf32>
    %cst_67 = arith.constant 2.000000e+00 : f32
    %172 = vector.broadcast %cst_67 : f32 to vector<1x64xf32>
    %173 = arith.mulf %172, %171 : vector<1x64xf32>
    %cst_68 = arith.constant 1.000000e+00 : f32
    %174 = vector.broadcast %cst_68 : f32 to vector<1x64xf32>
    %175 = arith.subf %173, %174 : vector<1x64xf32>
    %176 = arith.mulf %169, %153 : vector<1x64xf32>
    %177 = arith.mulf %168, %175 : vector<1x64xf32>
    %178 = arith.addf %176, %177 : vector<1x64xf32>
    %179 = math.tanh %178 : vector<1x64xf32>
    %180 = arith.mulf %170, %179 : vector<1x64xf32>
    %181 = vector.extract_strided_slice %180 {offsets = [0, 0], sizes = [1, 32], strides = [1, 1]} : vector<1x64xf32> to vector<1x32xf32>
    %c6_69 = arith.constant 6 : index
    %c0_70 = arith.constant 0 : index
    %182 = vector.load %arg8[%c6_69, %c0_70] : memref<8x64xf32, #tpu.memory_space<vmem>>, vector<1x32xf32>
    tpu.vector_store %arg8[%c6_69, %c0_70], %181 {strides = array<i32>} : memref<8x64xf32, #tpu.memory_space<vmem>>, vector<1x32xf32>,
    %183 = vector.extract_strided_slice %180 {offsets = [0, 32], sizes = [1, 32], strides = [1, 1]} : vector<1x64xf32> to vector<1x32xf32>
    %c1_71 = arith.constant 1 : index
    %c32_72 = arith.constant 32 : index
    %184 = vector.load %arg8[%c1_71, %c32_72] : memref<8x64xf32, #tpu.memory_space<vmem>>, vector<1x32xf32>
    tpu.vector_store %arg8[%c1_71, %c32_72], %183 {strides = array<i32>} : memref<8x64xf32, #tpu.memory_space<vmem>>, vector<1x32xf32>,
    %c7_73 = arith.constant 7 : index
    %c0_74 = arith.constant 0 : index
    %185 = vector.load %arg7[%c7_73, %c0_74] : memref<8x256xf32, #tpu.memory_space<vmem>>, vector<1x256xf32>
    %cst_75 = arith.constant dense<0.000000e+00> : vector<1x256xf32>
    %186 = tpu.matmul %180, %7, %cst_75 {dimension_numbers = #tpu.dot_dimension_numbers<[1], [0], [0], [1], [0, 0, 1, 1], [], []>} : vector<1x64xf32>, vector<64x256xf32>, vector<1x256xf32> -> vector<1x256xf32>
    %187 = arith.addf %185, %186 : vector<1x256xf32>
    %188 = arith.negf %187 : vector<1x256xf32>
    %189 = math.exp %188 : vector<1x256xf32>
    %cst_76 = arith.constant 1.000000e+00 : f32
    %190 = vector.broadcast %cst_76 : f32 to vector<1x256xf32>
    %191 = arith.addf %190, %189 : vector<1x256xf32>
    %192 = arith.divf %190, %191 : vector<1x256xf32>
    %193 = vector.extract_strided_slice %192 {offsets = [0, 0], sizes = [1, 64], strides = [1, 1]} : vector<1x256xf32> to vector<1x64xf32>
    %194 = vector.extract_strided_slice %192 {offsets = [0, 64], sizes = [1, 64], strides = [1, 1]} : vector<1x256xf32> to vector<1x64xf32>
    %195 = vector.extract_strided_slice %192 {offsets = [0, 128], sizes = [1, 64], strides = [1, 1]} : vector<1x256xf32> to vector<1x64xf32>
    %196 = vector.extract_strided_slice %192 {offsets = [0, 192], sizes = [1, 64], strides = [1, 1]} : vector<1x256xf32> to vector<1x64xf32>
    %cst_77 = arith.constant 2.000000e+00 : f32
    %197 = vector.broadcast %cst_77 : f32 to vector<1x64xf32>
    %198 = arith.mulf %197, %196 : vector<1x64xf32>
    %cst_78 = arith.constant 1.000000e+00 : f32
    %199 = vector.broadcast %cst_78 : f32 to vector<1x64xf32>
    %200 = arith.subf %198, %199 : vector<1x64xf32>
    %201 = arith.mulf %194, %178 : vector<1x64xf32>
    %202 = arith.mulf %193, %200 : vector<1x64xf32>
    %203 = arith.addf %201, %202 : vector<1x64xf32>
    %204 = math.tanh %203 : vector<1x64xf32>
    %205 = arith.mulf %195, %204 : vector<1x64xf32>
    %206 = vector.extract_strided_slice %205 {offsets = [0, 0], sizes = [1, 32], strides = [1, 1]} : vector<1x64xf32> to vector<1x32xf32>
    %c7_79 = arith.constant 7 : index
    %c0_80 = arith.constant 0 : index
    %207 = vector.load %arg8[%c7_79, %c0_80] : memref<8x64xf32, #tpu.memory_space<vmem>>, vector<1x32xf32>
    tpu.vector_store %arg8[%c7_79, %c0_80], %206 {strides = array<i32>} : memref<8x64xf32, #tpu.memory_space<vmem>>, vector<1x32xf32>,
    %208 = vector.extract_strided_slice %205 {offsets = [0, 32], sizes = [1, 32], strides = [1, 1]} : vector<1x64xf32> to vector<1x32xf32>
    %c0_81 = arith.constant 0 : index
    %c32_82 = arith.constant 32 : index
    %209 = vector.load %arg8[%c0_81, %c32_82] : memref<8x64xf32, #tpu.memory_space<vmem>>, vector<1x32xf32>
    tpu.vector_store %arg8[%c0_81, %c32_82], %208 {strides = array<i32>} : memref<8x64xf32, #tpu.memory_space<vmem>>, vector<1x32xf32>,
    %c0_83 = arith.constant 0 : index
    %c0_84 = arith.constant 0 : index
    %210 = vector.load %arg8[%c0_83, %c0_84] : memref<8x64xf32, #tpu.memory_space<vmem>>, vector<8x64xf32>
    %c0_85 = arith.constant 0 : index
    %c0_86 = arith.constant 0 : index
    %211 = vector.load %arg4[%c0_85, %c0_86] : memref<64x128xf32, #tpu.memory_space<vmem>>, vector<64x128xf32>
    %cst_87 = arith.constant dense<0.000000e+00> : vector<8x128xf32>
    %212 = tpu.matmul %210, %211, %cst_87 {dimension_numbers = #tpu.dot_dimension_numbers<[1], [0], [0], [1], [0, 0, 1, 1], [], []>} : vector<8x64xf32>, vector<64x128xf32>, vector<8x128xf32> -> vector<8x128xf32>
    %c0_88 = arith.constant 0 : index
    %c0_89 = arith.constant 0 : index
    %213 = vector.load %arg5[%c0_88, %c0_89] : memref<1x128xf32, #tpu.memory_space<vmem>>, vector<1x128xf32>
    %214 = vector.broadcast %213 : vector<1x128xf32> to vector<8x128xf32>
    %215 = arith.addf %212, %214 : vector<8x128xf32>
    %c0_90 = arith.constant 0 : index
    %c0_91 = arith.constant 0 : index
    %216 = vector.load %arg6[%c0_90, %c0_91] : memref<8x128xf32, #tpu.memory_space<vmem>>, vector<8x128xf32>
    tpu.vector_store %arg6[%c0_90, %c0_91], %215 {strides = array<i32>} : memref<8x128xf32, #tpu.memory_space<vmem>>, vector<8x128xf32>,
    return
  }
}

</mosaic_0001>

<bundles_post_ra>
// kernel: bilstm_tagger.1
= control target key start
LH: loop header
LB: loop body
LE: loop exit
PB: predicated region body
PF: predicated region fallthrough
CT: control target
= control target key end

     0   :  { %11 = vsyncpa [#allocation5], 0  ;;  %s1929_s0 = inlined_call_operand.vmem [shape: f32[8,64], index: 0, kind: input, shape index: {}]   ;;  %s1930_s1 = inlined_call_operand.hbm [shape: f32[64,256], index: 1, kind: input, shape index: {}]   ;;  %s1931_s2 = inlined_call_operand.hbm [shape: f32[64,256], index: 2, kind: input, shape index: {}]   ;;  %s1932_s3 = inlined_call_operand.vmem [shape: f32[1,256], index: 3, kind: input, shape index: {}]   ;;  %s1933_s4 = inlined_call_operand.hbm [shape: f32[64,128], index: 4, kind: input, shape index: {}]   ;;  %s1934_s5 = inlined_call_operand.vmem [shape: f32[1,128], index: 5, kind: input, shape index: {}]   ;;  %s1935_s6 = inlined_call_operand.hbm [shape: f32[8,128], index: 6, kind: output, shape index: {}]  }
   0x1   :  { %12 = vsyncpa [#allocation8], 0 }
   0x2   :  { %13 = vsyncpa [#allocation6], 0  ;;  %s1659_s21 = smov [#allocation7]   ;;  %s1660_s23 = smov [#allocation4]  }
   0x3   :  { %s33_s22 = sshll.u32 %s1659_s21, 4  ;;  %s21_s24 = sshll.u32 %s1660_s23, 4  ;;  %s34_s22 = int_to_ptr.vmem [resolvable:$true] %s33_s22  ;;  %s1707_s24 = int_to_ptr.vmem [resolvable:$true] %s21_s24 }
   0x4   :  { %s1565_s27 = scalar_lea.hbm %s1931_s2, 2048 }
   0x5   :  { %p1566_p0 = scmp.ne.s32.totalorder %s1931_s2, %s1565_s27  ;;  %p1569_p1 = scmp.lt.u32.totalorder %s1565_s27, %s1931_s2 }
   0x7   :  { %p1571_p2 = pnand %p1569_p1, %p1566_p0 }
   0x9   :  { %1574 = shalt.err (!%p1571_p2)
}
   0xa   :  { %s1575_s8 = scalar_lea.vmem %s34_s22, 2048  ;;  %p1580_p4 = scmp.lt.s32.totalorder %s34_s22, %s34_s22 }
   0xb   :  { %p1576_p3 = scmp.ne.s32.totalorder %s34_s22, %s1575_s8  ;;  %p1581_p5 = scmp.lt.s32.totalorder %s1575_s8, %s1575_s8 }
   0xd   :  { %p1582_p6 = por %p1581_p5, %p1580_p4 }
   0xf   :  { %p1583_p7 = pnand %p1582_p6, %p1576_p3 }
  0x11   :  { %1586 = shalt.err (!%p1583_p7)
}
  0x12   :  { %s1661_s9 = smov 256   ;;  %s1662_s10 = smov 16  }
  0x13   :  { %39 = dma.hbm_to_vmem [thread:$0]  %s1931_s2, 2048, %s34_s22, [#allocation8], %s1661_s9, %s1661_s9, %s1662_s10  }
  0x14   :  { %s1587_s15 = scalar_lea.hbm %s1930_s1, 2048 }
  0x15   :  { %p1588_p8 = scmp.ne.s32.totalorder %s1930_s1, %s1587_s15  ;;  %p1591_p9 = scmp.lt.u32.totalorder %s1587_s15, %s1930_s1 }
  0x17   :  { %p1593_p10 = pnand %p1591_p9, %p1588_p8 }
  0x19   :  { %1596 = shalt.err (!%p1593_p10)
}
  0x1a   :  { %s1597_s20 = scalar_lea.vmem %s1707_s24, 2048  ;;  %p1602_p12 = scmp.lt.s32.totalorder %s1707_s24, %s1707_s24 }
  0x1b   :  { %p1598_p11 = scmp.ne.s32.totalorder %s1707_s24, %s1597_s20  ;;  %p1603_p13 = scmp.lt.s32.totalorder %s1597_s20, %s1597_s20 }
  0x1d   :  { %p1604_p0 = por %p1603_p13, %p1602_p12 }
  0x1f   :  { %p1605_p1 = pnand %p1604_p0, %p1598_p11 }
  0x21   :  { %1608 = shalt.err (!%p1605_p1)
}
  0x22   :  { %27 = dma.hbm_to_vmem [thread:$0]  %s1930_s1, 2048, %s1707_s24, [#allocation5], %s1661_s9, %s1661_s9, %s1662_s10  }
  0x23   :  { %s1663_s22 = smov [#allocation9]   ;;  %s1609_s27 = scalar_lea.hbm %s1933_s4, 1024 }
  0x24   :  { %s47_s23 = sshll.u32 %s1663_s22, 4  ;;  %p1610_p2 = scmp.ne.s32.totalorder %s1933_s4, %s1609_s27  ;;  %s48_s23 = int_to_ptr.vmem [resolvable:$true] %s47_s23 }
  0x25   :  { %p1613_p3 = scmp.lt.u32.totalorder %s1609_s27, %s1933_s4 }
  0x27   :  { %p1615_p4 = pnand %p1613_p3, %p1610_p2 }
  0x29   :  { %1618 = shalt.err (!%p1615_p4)
}
  0x2a   :  { %s1619_s8 = scalar_lea.vmem %s48_s23, 1024  ;;  %p1624_p6 = scmp.lt.s32.totalorder %s48_s23, %s48_s23 }
  0x2b   :  { %p1620_p5 = scmp.ne.s32.totalorder %s48_s23, %s1619_s8  ;;  %p1625_p7 = scmp.lt.s32.totalorder %s1619_s8, %s1619_s8 }
  0x2d   :  { %p1626_p8 = por %p1625_p7, %p1624_p6 }
  0x2f   :  { %p1627_p9 = pnand %p1626_p8, %p1620_p5 }
  0x31   :  { %1630 = shalt.err (!%p1627_p9)
}
  0x32   :  { %s1664_s1 = smov 128   ;;  %s1665_s24 = smov 8  }
  0x33   :  { %53 = dma.hbm_to_vmem [thread:$0]  %s1933_s4, 1024, %s48_s23, [#allocation8], %s1664_s1, %s1664_s1, %s1665_s24  }
  0x34   :  { %1653 = dma.done.wait [#allocation5], 2048  }
  0x35   :  { %1654 = vsyncadd [#allocation5], 4294965248 }
  0x36   :  { %1655 = dma.done.wait [#allocation8], 3072  }
  0x37   :  { %1656 = vsyncadd [#allocation8], 4294964224  ;;  %v1666_v0 = vmov 0.0   ;;  %v67_v1 = vld [vmem:[#allocation4 + $0x8] sm:$0xff]  ;;  %v69_v2 = vld [vmem:[#allocation4 + $0x18] sm:$0xff]  ;;  %vm94_vm0 = vcmask 523264   ;;  %v84_v50 = vlaneseq }
  0x38   :  { %162 = vmatprep.mubr.f32.mxu0 %v1666_v0  ;;  %255 = vmatprep.mubr.f32.mxu1 %v1666_v0  ;;  %v66_v3 = vld [vmem:[#allocation4] sm:$0xff]  ;;  %v1348_v4 = vpack.c.bf16 %v69_v2, %v67_v1  ;;  %v68_v5 = vld [vmem:[#allocation4 + $0x10] sm:$0xff]  ;;  %v172_v6 = vld [vmem:[#allocation7 + $0x8] sm:$0xff]  ;;  %v1667_v54 = vmov 1966171168   ;;  %vm309_vm1 = vcmask 253952  }
  0x39   :  { %v174_v7 = vld [vmem:[#allocation7 + $0x18] sm:$0xff]  ;;  %v1350_v8 = vpack.c.bf16 %v68_v5, %v66_v3  ;;  %v71_v10 = vld [vmem:[#allocation4 + $0x28] sm:$0xff]  ;;  %v171_v12 = vld [vmem:[#allocation7] sm:$0xff]  ;;  %v85_v51 = vshrl.u32 %v84_v50, 7  ;;  %v266_v55 = vunpack.c.l.s4 %v1667_v54  ;;  %vm311_vm2 = vcmask 516352   ;;  %s1671_s15 = smov [#allocation10]  }
  0x3a   :  { %v1752_v9 = vpack.c.bf16 %v174_v7, %v172_v6  ;;  %v73_v11 = vld [vmem:[#allocation4 + $0x38] sm:$0xff]  ;;  %1349 = vmatprep.subr.bf16.mxu0 %v1348_v4  ;;  %v173_v14 = vld [vmem:[#allocation7 + $0x10] sm:$0xff]  ;;  %v70_v15 = vld [vmem:[#allocation4 + $0x20] sm:$0xff]  ;;  %vm1670_vm3 = vmmov 0   ;;  %s1284_s16 = sshll.u32 %s1671_s15, 4  ;;  %s1285_s16 = int_to_ptr.vmem [resolvable:$true] %s1284_s16 }
  0x3b   :  { %v1352_v13 = vpack.c.bf16 %v73_v11, %v71_v10  ;;  %v72_v16 = vld [vmem:[#allocation4 + $0x30] sm:$0xff]  ;;  %1351 = vmatpush1.bf16.msra.mxu0 %v1350_v8  ;;  %v1755_v17 = vpack.c.bf16 %v173_v14, %v171_v12  ;;  %v176_v19 = vld [vmem:[#allocation7 + $0x28] sm:$0xff]  ;;  %v178_v20 = vld [vmem:[#allocation7 + $0x38] sm:$0xff]  ;;  %v86_v52 = vsub.s32 0, %v85_v51  ;;  %v90_v56 = vsub.s32 1, %v85_v51  ;;  %s1631_s17 = scalar_lea.vmem %s1285_s16, 128  ;;  %p1636_p11 = scmp.lt.s32.totalorder %s1285_s16, %s1285_s16 }
  0x3c   :  { %1365 = vmatprep.subr.bf16.mxu1 %v1752_v9  ;;  %v1354_v18 = vpack.c.bf16 %v72_v16, %v70_v15  ;;  %v75_v21 = vld [vmem:[#allocation4 + $0x48] sm:$0xff]  ;;  %v1757_v22 = vpack.c.bf16 %v178_v20, %v176_v19  ;;  %v77_v23 = vld [vmem:[#allocation4 + $0x58] sm:$0xff]  ;;  %v175_v24 = vld [vmem:[#allocation7 + $0x20] sm:$0xff]  ;;  %v267_v58 = vunpack.c.0.s8 %v266_v55  ;;  %p1632_p10 = scmp.ne.s32.totalorder %s1285_s16, %s1631_s17  ;;  %p1637_p12 = scmp.lt.s32.totalorder %s1631_s17, %s1631_s17 }
  0x3d   :  { %1353 = vmatprep.subr.bf16.mxu0 %v1352_v13  ;;  %v177_v25 = vld [vmem:[#allocation7 + $0x30] sm:$0xff]  ;;  %1367 = vmatpush1.bf16.msra.mxu1 %v1755_v17  ;;  %v1356_v26 = vpack.c.bf16 %v77_v23, %v75_v21  ;;  %v74_v28 = vld [vmem:[#allocation4 + $0x40] sm:$0xff]  ;;  %v180_v30 = vld [vmem:[#allocation7 + $0x48] sm:$0xff] }
  0x3e   :  { %v1760_v27 = vpack.c.bf16 %v177_v25, %v175_v24  ;;  %v76_v29 = vld [vmem:[#allocation4 + $0x50] sm:$0xff]  ;;  %1369 = vmatprep.subr.bf16.mxu1 %v1757_v22  ;;  %v182_v31 = vld [vmem:[#allocation7 + $0x58] sm:$0xff]  ;;  %v79_v32 = vld [vmem:[#allocation4 + $0x68] sm:$0xff]  ;;  %v1804_v63 = vsub.s32 %v267_v58, %v85_v51  ;;  %p1638_p13 = por %p1637_p12, %p1636_p11 }
  0x3f   :  { %v81_v33 = vld [vmem:[#allocation4 + $0x78] sm:$0xff]  ;;  %1355 = vmatpush1.bf16.msra.mxu0 %v1354_v18  ;;  %v1358_v34 = vpack.c.bf16 %v76_v29, %v74_v28  ;;  %v1763_v35 = vpack.c.bf16 %v182_v31, %v180_v30  ;;  %v179_v36 = vld [vmem:[#allocation7 + $0x40] sm:$0xff]  ;;  %v181_v37 = vld [vmem:[#allocation7 + $0x50] sm:$0xff] }
  0x40   :  { %v78_v38 = vld [vmem:[#allocation4 + $0x60] sm:$0xff]  ;;  %1357 = vmatprep.subr.bf16.mxu0 %v1356_v26  ;;  %v1360_v39 = vpack.c.bf16 %v81_v33, %v79_v32  ;;  %v80_v40 = vld [vmem:[#allocation4 + $0x70] sm:$0xff]  ;;  %v184_v41 = vld [vmem:[#allocation7 + $0x68] sm:$0xff]  ;;  %v1766_v43 = vpack.c.bf16 %v181_v37, %v179_v36  ;;  %p1639_p0 = pnand %p1638_p13, %p1632_p10 }
  0x41   :  { %v186_v42 = vld [vmem:[#allocation7 + $0x78] sm:$0xff]  ;;  %1371 = vmatpush1.bf16.msra.mxu1 %v1760_v27  ;;  %v183_v45 = vld [vmem:[#allocation7 + $0x60] sm:$0xff]  ;;  %v185_v46 = vld [vmem:[#allocation7 + $0x70] sm:$0xff]  ;;  %v1362_v47 = vpack.c.bf16 %v80_v40, %v78_v38 }
  0x42   :  { %1373 = vmatprep.subr.bf16.mxu1 %v1763_v35  ;;  %v1769_v44 = vpack.c.bf16 %v186_v42, %v184_v41  ;;  %v1772_v48 = vpack.c.bf16 %v185_v46, %v183_v45  ;;  %v65_v49 = vld [vmem:[%s1929_s0] sm:$0xff] }
  0x43   :  { %1359 = vmatpush1.bf16.msra.mxu0 %v1358_v34  ;;  %v82_v53 = vld [vmem:[%s1932_s3] sm:$0x3]  ;;  %s1668_s3 = smov 64  }
  0x44   :  { %1361 = vmatprep.subr.bf16.mxu0 %v1360_v39  ;;  %v87_v57 = vrot.slane %v82_v53, %v86_v52  ;;  %v91_v59 = vrot.slane %v82_v53, %v90_v56 }
  0x45   :  { %1375 = vmatpush1.bf16.msra.mxu1 %v1766_v43 }
  0x46   :  { %1377 = vmatprep.subr.bf16.mxu1 %v1769_v44 }
  0x47   :  { %1363 = vmatpush1.bf16.msra.mxu0 %v1362_v47 }
  0x48   :  { %1381 = vmatprep.subr.bf16.mxu0 %v1752_v9 }
  0x49   :  { %1379 = vmatpush1.bf16.msra.mxu1 %v1772_v48 }
  0x4a   :  { %1294 = vmatmul.mubr.msk.f32.vlgmr.msra.gmra.mrb[0].mxu0 %vm94_vm0, %v65_v49  ;;  %1397 = vmatprep.subr.bf16.mxu1 %v1752_v9 }
  0x4b   :  { %1383 = vmatpush1.bf16.msra.mxu0 %v1755_v17  ;;  %382 = vmatprep.mubr.f32.mxu0 %v1666_v0 }
  0x4c   :  { %256 = vmatmul.mubr.f32.vlgmr.msra.gmra.mrb[0].mxu1 %v1666_v0  ;;  %1385 = vmatprep.subr.bf16.mxu0 %v1757_v22 }
  0x4d   :  { %1399 = vmatpush1.bf16.msra.mxu1 %v1755_v17  ;;  %507 = vmatprep.mubr.f32.mxu1 %v1666_v0 }
  0x4e   :  { %1401 = vmatprep.subr.bf16.mxu1 %v1757_v22 }
  0x4f   :  { %1387 = vmatpush1.bf16.msra.mxu0 %v1760_v27 }
  0x50   :  { %1389 = vmatprep.subr.bf16.mxu0 %v1763_v35 }
  0x51   :  { %1403 = vmatpush1.bf16.msra.mxu1 %v1760_v27 }
  0x52   :  { %1405 = vmatprep.subr.bf16.mxu1 %v1763_v35 }
  0x53   :  { %1391 = vmatpush1.bf16.msra.mxu0 %v1766_v43 }
  0x54   :  { %1393 = vmatprep.subr.bf16.mxu0 %v1769_v44 }
  0x55   :  { %1407 = vmatpush1.bf16.msra.mxu1 %v1766_v43 }
  0x56   :  { %1409 = vmatprep.subr.bf16.mxu1 %v1769_v44 }
  0x57   :  { %1395 = vmatpush1.bf16.msra.mxu0 %v1772_v48 }
  0x58   :  { %1413 = vmatprep.subr.bf16.mxu0 %v1752_v9 }
  0x59   :  { %1411 = vmatpush1.bf16.msra.mxu1 %v1772_v48 }
  0x5a   :  { %1429 = vmatprep.subr.bf16.mxu1 %v1752_v9 }
 0x11d   :  { %v164_v60 = vpop.f32.mrb[0].mxu0 }
 0x11e   :  { %v165_v61 = vadd.f32 %v164_v60, %v87_v57  ;;  %v166_v62 = vpop.f32.mrb[1].mxu0 }
 0x11f   :  { %v167_v1 = vadd.f32 %v166_v62, %v91_v59  ;;  %v257_v2 = vpop.f32.mrb[0].mxu1 }
 0x120   :  { %169 = vst [vmem:[#allocation2] sm:$0xff] %v165_v61  ;;  %v259_v3 = vpop.f32.mrb[1].mxu1 }
 0x121   :  { %170 = vst [vmem:[#allocation2 + $0x8] sm:$0xff] %v167_v1  ;;  %v264_v4 = vcombine.low %v257_v2, %v259_v3 }
 0x123   :  { %v271_v5 = vrot.slane %v264_v4, %v1804_v63 }
 0x125   :  { %v278_v6 = vrot.slane %v271_v5, %v1804_v63 }
 0x128   :  { %v187_v7 = vld [vmem:[#allocation2] ss:$8 sm:$0x3]  ;;  %v314_v34 = vld [vmem:[#allocation2 + $0x1] ss:$8 sm:$0x3] }
 0x129   :  { %v280_v8 = vadd.f32 %v278_v6, %v187_v7  ;;  %v439_v61 = vld [vmem:[#allocation2 + $0x2] ss:$8 sm:$0x3] }
 0x12b   :  { %v1295_v10 = vmul.f32 -1.442695, %v280_v8 }
 0x12d   :  { %1517 = vpow2.f32 %v1295_v10 }
 0x137   :  { %v1518_v11 = vpop.eup %1517 }
 0x138   :  { %v284_v12 = vadd.f32 1.0, %v1518_v11 }
 0x13a   :  { %1519 = vrcp.f32 %v284_v12 }
 0x144   :  { %v1520_v13 = vpop.eup %1519 }
 0x145   :  { %288 = vrot.lane.b32.xlu0 %v1520_v13, %s1668_s3  ;;  %v294_v20 = vmul.f32 0.0, %v1520_v13  ;;  %v302_v25 = vrot.slane %v1520_v13, 1 }
 0x1b7   :  { %v289_v14 = vpop.permute.xlu0 %288 }
 0x1b8   :  { %v290_v15 = vrot.slane %v289_v14, 1 }
 0x1ba   :  { %v292_v16 = vmul.f32 2.0, %v290_v15 }
 0x1bc   :  { %v1296_v18 = vadd.f32 -1.0, %v292_v16 }
 0x1be   :  { %v295_v19 = vmul.f32 %v1520_v13, %v1296_v18 }
 0x1c0   :  { %297 = vrot.lane.b32.xlu0 %v295_v19, %s1668_s3 }
 0x232   :  { %v298_v21 = vpop.permute.xlu0 %297 }
 0x233   :  { %v300_v23 = vadd.f32 %v298_v21, %v294_v20 }
 0x235   :  { %1521 = vtanh.f32 %v300_v23 }
 0x23f   :  { %v1522_v24 = vpop.eup %1521 }
 0x240   :  { %305 = vrot.lane.b32.xlu1 %v1522_v24, %s1668_s3 }
 0x2b2   :  { %v306_v26 = vpop.permute.xlu1 %305 }
 0x2b3   :  { %v308_v28 = vmul.f32 %v306_v26, %v302_v25  ;;  %v564_v25 = vld [vmem:[#allocation2 + $0x3] ss:$8 sm:$0x3] }
 0x2b5   :  { %310 = vst.msk [vmem:[#allocation3] sm:$0x1] %vm309_vm1, %v308_v28  ;;  %1297 = vmatmul.mubr.msk.f32.vlgmr.msra.gmra.mrb[2].mxu0 %vm94_vm0, %v308_v28 }
 0x2b6   :  { %312 = vst.msk [vmem:[#allocation3 + $0x7] sm:$0x1] %vm311_vm2, %v308_v28  ;;  %1415 = vmatpush1.bf16.msra.mxu0 %v1755_v17  ;;  %632 = vmatprep.mubr.f32.mxu0 %v1666_v0 }
 0x2b7   :  { %1417 = vmatprep.subr.bf16.mxu0 %v1757_v22 }
 0x2ba   :  { %1419 = vmatpush1.bf16.msra.mxu0 %v1760_v27 }
 0x2bb   :  { %1421 = vmatprep.subr.bf16.mxu0 %v1763_v35 }
 0x2be   :  { %1423 = vmatpush1.bf16.msra.mxu0 %v1766_v43 }
 0x2bf   :  { %1425 = vmatprep.subr.bf16.mxu0 %v1769_v44 }
 0x2c2   :  { %1427 = vmatpush1.bf16.msra.mxu0 %v1772_v48 }
 0x2c3   :  { %1445 = vmatprep.subr.bf16.mxu0 %v1752_v9 }
 0x388   :  { %v384_v29 = vpop.f32.mrb[2].mxu0 }
 0x389   :  { %v386_v30 = vpop.f32.mrb[3].mxu0 }
 0x38a   :  { %v391_v31 = vcombine.low %v384_v29, %v386_v30 }
 0x38c   :  { %v398_v32 = vrot.slane %v391_v31, %v1804_v63 }
 0x38e   :  { %v405_v33 = vrot.slane %v398_v32, %v1804_v63 }
 0x390   :  { %v407_v36 = vadd.f32 %v405_v33, %v314_v34 }
 0x392   :  { %v1298_v37 = vmul.f32 -1.442695, %v407_v36 }
 0x394   :  { %1523 = vpow2.f32 %v1298_v37 }
 0x39e   :  { %v1524_v38 = vpop.eup %1523 }
 0x39f   :  { %v411_v39 = vadd.f32 1.0, %v1524_v38 }
 0x3a1   :  { %1525 = vrcp.f32 %v411_v39 }
 0x3ab   :  { %v1526_v40 = vpop.eup %1525 }
 0x3ac   :  { %415 = vrot.lane.b32.xlu1 %v1526_v40, %s1668_s3  ;;  %v421_v49 = vmul.f32 %v1526_v40, %v300_v23  ;;  %v429_v53 = vrot.slane %v1526_v40, 1 }
 0x41e   :  { %v416_v41 = vpop.permute.xlu1 %415 }
 0x41f   :  { %v417_v42 = vrot.slane %v416_v41, 1 }
 0x421   :  { %v419_v45 = vmul.f32 2.0, %v417_v42 }
 0x423   :  { %v1299_v46 = vadd.f32 -1.0, %v419_v45 }
 0x425   :  { %v422_v47 = vmul.f32 %v1526_v40, %v1299_v46 }
 0x427   :  { %424 = vrot.lane.b32.xlu0 %v422_v47, %s1668_s3 }
 0x499   :  { %v425_v50 = vpop.permute.xlu0 %424 }
 0x49a   :  { %v427_v51 = vadd.f32 %v425_v50, %v421_v49 }
 0x49c   :  { %1527 = vtanh.f32 %v427_v51 }
 0x4a6   :  { %v1528_v52 = vpop.eup %1527 }
 0x4a7   :  { %432 = vrot.lane.b32.xlu1 %v1528_v52, %s1668_s3  ;;  %v689_v52 = vld [vmem:[#allocation2 + $0x4] ss:$8 sm:$0x3] }
 0x519   :  { %v433_v54 = vpop.permute.xlu1 %432 }
 0x51a   :  { %v435_v55 = vmul.f32 %v433_v54, %v429_v53 }
 0x51c   :  { %436 = vst.msk [vmem:[#allocation3 + $0x1] sm:$0x1] %vm309_vm1, %v435_v55  ;;  %1300 = vmatmul.mubr.msk.f32.vlgmr.msra.gmra.mrb[2].mxu1 %vm94_vm0, %v435_v55 }
 0x51d   :  { %437 = vst.msk [vmem:[#allocation3 + $0x6] sm:$0x1] %vm311_vm2, %v435_v55  ;;  %1431 = vmatpush1.bf16.msra.mxu1 %v1755_v17  ;;  %757 = vmatprep.mubr.f32.mxu1 %v1666_v0 }
 0x51e   :  { %1433 = vmatprep.subr.bf16.mxu1 %v1757_v22 }
 0x521   :  { %1435 = vmatpush1.bf16.msra.mxu1 %v1760_v27 }
 0x522   :  { %1437 = vmatprep.subr.bf16.mxu1 %v1763_v35 }
 0x525   :  { %1439 = vmatpush1.bf16.msra.mxu1 %v1766_v43 }
 0x526   :  { %1441 = vmatprep.subr.bf16.mxu1 %v1769_v44 }
 0x529   :  { %1443 = vmatpush1.bf16.msra.mxu1 %v1772_v48 }
 0x52a   :  { %1461 = vmatprep.subr.bf16.mxu1 %v1752_v9 }
 0x5ef   :  { %v509_v56 = vpop.f32.mrb[2].mxu1 }
 0x5f0   :  { %v511_v57 = vpop.f32.mrb[3].mxu1 }
 0x5f1   :  { %v516_v58 = vcombine.low %v509_v56, %v511_v57 }
 0x5f3   :  { %v523_v59 = vrot.slane %v516_v58, %v1804_v63 }
 0x5f5   :  { %v530_v60 = vrot.slane %v523_v59, %v1804_v63 }
 0x5f7   :  { %v532_v62 = vadd.f32 %v530_v60, %v439_v61 }
 0x5f9   :  { %v1301_v1 = vmul.f32 -1.442695, %v532_v62 }
 0x5fb   :  { %1529 = vpow2.f32 %v1301_v1 }
 0x605   :  { %v1530_v2 = vpop.eup %1529 }
 0x606   :  { %v536_v3 = vadd.f32 1.0, %v1530_v2 }
 0x608   :  { %1531 = vrcp.f32 %v536_v3 }
 0x612   :  { %v1532_v4 = vpop.eup %1531 }
 0x613   :  { %540 = vrot.lane.b32.xlu0 %v1532_v4, %s1668_s3  ;;  %v546_v11 = vmul.f32 %v1532_v4, %v427_v51  ;;  %v554_v15 = vrot.slane %v1532_v4, 1 }
 0x685   :  { %v541_v5 = vpop.permute.xlu0 %540 }
 0x686   :  { %v542_v6 = vrot.slane %v541_v5, 1 }
 0x688   :  { %v544_v7 = vmul.f32 2.0, %v542_v6 }
 0x68a   :  { %v1302_v8 = vadd.f32 -1.0, %v544_v7 }
 0x68c   :  { %v547_v10 = vmul.f32 %v1532_v4, %v1302_v8 }
 0x68e   :  { %549 = vrot.lane.b32.xlu1 %v547_v10, %s1668_s3 }
 0x700   :  { %v550_v12 = vpop.permute.xlu1 %549 }
 0x701   :  { %v552_v13 = vadd.f32 %v550_v12, %v546_v11 }
 0x703   :  { %1533 = vtanh.f32 %v552_v13 }
 0x70d   :  { %v1534_v14 = vpop.eup %1533 }
 0x70e   :  { %557 = vrot.lane.b32.xlu0 %v1534_v14, %s1668_s3 }
 0x780   :  { %v558_v16 = vpop.permute.xlu0 %557 }
 0x781   :  { %v560_v18 = vmul.f32 %v558_v16, %v554_v15 }
 0x783   :  { %561 = vst.msk [vmem:[#allocation3 + $0x2] sm:$0x1] %vm309_vm1, %v560_v18  ;;  %1303 = vmatmul.mubr.msk.f32.vlgmr.msra.gmra.mrb[4].mxu0 %vm94_vm0, %v560_v18 }
 0x784   :  { %562 = vst.msk [vmem:[#allocation3 + $0x5] sm:$0x1] %vm311_vm2, %v560_v18  ;;  %1447 = vmatpush1.bf16.msra.mxu0 %v1755_v17  ;;  %882 = vmatprep.mubr.f32.mxu0 %v1666_v0 }
 0x785   :  { %1449 = vmatprep.subr.bf16.mxu0 %v1757_v22 }
 0x788   :  { %1451 = vmatpush1.bf16.msra.mxu0 %v1760_v27 }
 0x789   :  { %1453 = vmatprep.subr.bf16.mxu0 %v1763_v35 }
 0x78c   :  { %1455 = vmatpush1.bf16.msra.mxu0 %v1766_v43 }
 0x78d   :  { %1457 = vmatprep.subr.bf16.mxu0 %v1769_v44 }
 0x790   :  { %1459 = vmatpush1.bf16.msra.mxu0 %v1772_v48 }
 0x791   :  { %1477 = vmatprep.subr.bf16.mxu0 %v1752_v9 }
 0x856   :  { %v634_v19 = vpop.f32.mrb[4].mxu0 }
 0x857   :  { %v636_v20 = vpop.f32.mrb[5].mxu0 }
 0x858   :  { %v641_v21 = vcombine.low %v634_v19, %v636_v20 }
 0x85a   :  { %v648_v23 = vrot.slane %v641_v21, %v1804_v63 }
 0x85c   :  { %v655_v24 = vrot.slane %v648_v23, %v1804_v63 }
 0x85e   :  { %v657_v26 = vadd.f32 %v655_v24, %v564_v25 }
 0x860   :  { %v1304_v28 = vmul.f32 -1.442695, %v657_v26 }
 0x862   :  { %1535 = vpow2.f32 %v1304_v28 }
 0x86c   :  { %v1536_v29 = vpop.eup %1535 }
 0x86d   :  { %v661_v30 = vadd.f32 1.0, %v1536_v29 }
 0x86f   :  { %1537 = vrcp.f32 %v661_v30 }
 0x879   :  { %v1538_v31 = vpop.eup %1537 }
 0x87a   :  { %665 = vrot.lane.b32.xlu1 %v1538_v31, %s1668_s3  ;;  %v671_v37 = vmul.f32 %v1538_v31, %v552_v13  ;;  %v679_v41 = vrot.slane %v1538_v31, 1  ;;  %v814_v13 = vld [vmem:[#allocation2 + $0x5] ss:$8 sm:$0x3] }
 0x8ec   :  { %v666_v32 = vpop.permute.xlu1 %665 }
 0x8ed   :  { %v667_v33 = vrot.slane %v666_v32, 1 }
 0x8ef   :  { %v669_v9 = vmul.f32 2.0, %v667_v33  ;;  %v939_v33 = vld [vmem:[#allocation2 + $0x6] ss:$8 sm:$0x3] }
 0x8f1   :  { %v1305_v34 = vadd.f32 -1.0, %v669_v9 }
 0x8f3   :  { %v672_v36 = vmul.f32 %v1538_v31, %v1305_v34 }
 0x8f5   :  { %674 = vrot.lane.b32.xlu0 %v672_v36, %s1668_s3 }
 0x967   :  { %v675_v38 = vpop.permute.xlu0 %674 }
 0x968   :  { %v677_v39 = vadd.f32 %v675_v38, %v671_v37 }
 0x96a   :  { %1539 = vtanh.f32 %v677_v39 }
 0x974   :  { %v1540_v40 = vpop.eup %1539 }
 0x975   :  { %682 = vrot.lane.b32.xlu1 %v1540_v40, %s1668_s3 }
 0x9e7   :  { %v683_v42 = vpop.permute.xlu1 %682 }
 0x9e8   :  { %v685_v45 = vmul.f32 %v683_v42, %v679_v41 }
 0x9ea   :  { %686 = vst.msk [vmem:[#allocation3 + $0x3] sm:$0x1] %vm309_vm1, %v685_v45  ;;  %1306 = vmatmul.mubr.msk.f32.vlgmr.msra.gmra.mrb[4].mxu1 %vm94_vm0, %v685_v45 }
 0x9eb   :  { %687 = vst.msk [vmem:[#allocation3 + $0x4] sm:$0x1] %vm311_vm2, %v685_v45  ;;  %1463 = vmatpush1.bf16.msra.mxu1 %v1755_v17  ;;  %1007 = vmatprep.mubr.f32.mxu1 %v1666_v0 }
 0x9ec   :  { %1465 = vmatprep.subr.bf16.mxu1 %v1757_v22 }
 0x9ef   :  { %1467 = vmatpush1.bf16.msra.mxu1 %v1760_v27 }
 0x9f0   :  { %1469 = vmatprep.subr.bf16.mxu1 %v1763_v35 }
 0x9f3   :  { %1471 = vmatpush1.bf16.msra.mxu1 %v1766_v43 }
 0x9f4   :  { %1473 = vmatprep.subr.bf16.mxu1 %v1769_v44 }
 0x9f7   :  { %1475 = vmatpush1.bf16.msra.mxu1 %v1772_v48 }
 0xabd   :  { %v759_v46 = vpop.f32.mrb[4].mxu1 }
 0xabe   :  { %v761_v47 = vpop.f32.mrb[5].mxu1 }
 0xabf   :  { %v766_v49 = vcombine.low %v759_v46, %v761_v47 }
 0xac1   :  { %v773_v50 = vrot.slane %v766_v49, %v1804_v63 }
 0xac3   :  { %v780_v51 = vrot.slane %v773_v50, %v1804_v63 }
 0xac5   :  { %v782_v53 = vadd.f32 %v780_v51, %v689_v52 }
 0xac7   :  { %v1307_v54 = vmul.f32 -1.442695, %v782_v53 }
 0xac9   :  { %1541 = vpow2.f32 %v1307_v54 }
 0xad3   :  { %v1542_v55 = vpop.eup %1541 }
 0xad4   :  { %v786_v56 = vadd.f32 1.0, %v1542_v55 }
 0xad6   :  { %1543 = vrcp.f32 %v786_v56 }
 0xae0   :  { %v1544_v57 = vpop.eup %1543 }
 0xae1   :  { %790 = vrot.lane.b32.xlu0 %v1544_v57, %s1668_s3  ;;  %v796_v1 = vmul.f32 %v1544_v57, %v677_v39  ;;  %v804_v5 = vrot.slane %v1544_v57, 1 }
 0xb53   :  { %v791_v58 = vpop.permute.xlu0 %790 }
 0xb54   :  { %v792_v59 = vrot.slane %v791_v58, 1 }
 0xb56   :  { %v794_v60 = vmul.f32 2.0, %v792_v59  ;;  %v1064_v59 = vld [vmem:[#allocation2 + $0x7] ss:$8 sm:$0x3] }
 0xb58   :  { %v1308_v61 = vadd.f32 -1.0, %v794_v60 }
 0xb5a   :  { %v797_v62 = vmul.f32 %v1544_v57, %v1308_v61 }
 0xb5c   :  { %799 = vrot.lane.b32.xlu1 %v797_v62, %s1668_s3 }
 0xbce   :  { %v800_v2 = vpop.permute.xlu1 %799 }
 0xbcf   :  { %v802_v3 = vadd.f32 %v800_v2, %v796_v1 }
 0xbd1   :  { %1545 = vtanh.f32 %v802_v3 }
 0xbdb   :  { %v1546_v4 = vpop.eup %1545 }
 0xbdc   :  { %807 = vrot.lane.b32.xlu0 %v1546_v4, %s1668_s3 }
 0xc4e   :  { %v808_v6 = vpop.permute.xlu0 %807 }
 0xc4f   :  { %v810_v7 = vmul.f32 %v808_v6, %v804_v5 }
 0xc51   :  { %811 = vst.msk [vmem:[#allocation3 + $0x4] sm:$0x1] %vm309_vm1, %v810_v7  ;;  %1309 = vmatmul.mubr.msk.f32.vlgmr.msra.gmra.mrb[6].mxu0 %vm94_vm0, %v810_v7 }
 0xc52   :  { %812 = vst.msk [vmem:[#allocation3 + $0x3] sm:$0x1] %vm311_vm2, %v810_v7  ;;  %1479 = vmatpush1.bf16.msra.mxu0 %v1755_v17  ;;  %1132 = vmatprep.mubr.f32.mxu0 %v1666_v0 }
 0xc53   :  { %1481 = vmatprep.subr.bf16.mxu0 %v1757_v22 }
 0xc56   :  { %1483 = vmatpush1.bf16.msra.mxu0 %v1760_v27 }
 0xc57   :  { %1485 = vmatprep.subr.bf16.mxu0 %v1763_v35 }
 0xc5a   :  { %1487 = vmatpush1.bf16.msra.mxu0 %v1766_v43 }
 0xc5b   :  { %1489 = vmatprep.subr.bf16.mxu0 %v1769_v44 }
 0xc5e   :  { %1491 = vmatpush1.bf16.msra.mxu0 %v1772_v48 }
 0xd24   :  { %v884_v8 = vpop.f32.mrb[6].mxu0 }
 0xd25   :  { %v886_v10 = vpop.f32.mrb[7].mxu0 }
 0xd26   :  { %v891_v11 = vcombine.low %v884_v8, %v886_v10  ;;  %v1189_v8 = vld [vmem:[#allocation9] sm:$0xff]  ;;  %v1190_v10 = vld [vmem:[#allocation9 + $0x8] sm:$0xff] }
 0xd28   :  { %v898_v12 = vrot.slane %v891_v11, %v1804_v63  ;;  %v1669_v11 = vmov 0.0|0.0  }
 0xd29   :  { %1492 = vmatprep.subr.bf16.mxu1 %v1669_v11 }
 0xd2a   :  { %v905_v17 = vrot.slane %v898_v12, %v1804_v63  ;;  %v1493_v12 = vpack.c.bf16 %v1190_v10, %v1189_v8 }
 0xd2c   :  { %v907_v14 = vadd.f32 %v905_v17, %v814_v13  ;;  %v1192_v17 = vld [vmem:[#allocation9 + $0x18] sm:$0xff] }
 0xd2e   :  { %v1310_v22 = vmul.f32 -1.442695, %v907_v14 }
 0xd30   :  { %1547 = vpow2.f32 %v1310_v22 }
 0xd3a   :  { %v1548_v27 = vpop.eup %1547 }
 0xd3b   :  { %v911_v15 = vadd.f32 1.0, %v1548_v27 }
 0xd3d   :  { %1549 = vrcp.f32 %v911_v15  ;;  %v1193_v15 = vld [vmem:[#allocation9 + $0x20] sm:$0xff] }
 0xd47   :  { %v1550_v35 = vpop.eup %1549 }
 0xd48   :  { %915 = vrot.lane.b32.xlu1 %v1550_v35, %s1668_s3  ;;  %v921_v19 = vmul.f32 %v1550_v35, %v802_v3  ;;  %v929_v24 = vrot.slane %v1550_v35, 1 }
 0xdba   :  { %v916_v43 = vpop.permute.xlu1 %915 }
 0xdbb   :  { %v917_v44 = vrot.slane %v916_v43, 1  ;;  %v1195_v43 = vld [vmem:[#allocation9 + $0x30] sm:$0xff] }
 0xdbd   :  { %v919_v48 = vmul.f32 2.0, %v917_v44 }
 0xdbf   :  { %v1311_v16 = vadd.f32 -1.0, %v919_v48  ;;  %v1196_v48 = vld [vmem:[#allocation9 + $0x38] sm:$0xff] }
 0xdc1   :  { %v922_v18 = vmul.f32 %v1550_v35, %v1311_v16  ;;  %v1194_v35 = vld [vmem:[#allocation9 + $0x28] sm:$0xff]  ;;  %v1502_v16 = vpack.c.bf16 %v1196_v48, %v1195_v43 }
 0xdc2   :  { %v1499_v44 = vpack.c.bf16 %v1194_v35, %v1193_v15 }
 0xdc3   :  { %924 = vrot.lane.b32.xlu0 %v922_v18, %s1668_s3 }
 0xe35   :  { %v925_v20 = vpop.permute.xlu0 %924 }
 0xe36   :  { %v927_v21 = vadd.f32 %v925_v20, %v921_v19 }
 0xe38   :  { %1551 = vtanh.f32 %v927_v21 }
 0xe42   :  { %v1552_v23 = vpop.eup %1551 }
 0xe43   :  { %932 = vrot.lane.b32.xlu1 %v1552_v23, %s1668_s3 }
 0xeb5   :  { %v933_v25 = vpop.permute.xlu1 %932 }
 0xeb6   :  { %v935_v26 = vmul.f32 %v933_v25, %v929_v24 }
 0xeb8   :  { %936 = vst.msk [vmem:[#allocation3 + $0x5] sm:$0x1] %vm309_vm1, %v935_v26  ;;  %1312 = vmatmul.mubr.msk.f32.vlgmr.msra.gmra.mrb[6].mxu1 %vm94_vm0, %v935_v26 }
 0xeb9   :  { %937 = vst.msk [vmem:[#allocation3 + $0x2] sm:$0x1] %vm311_vm2, %v935_v26  ;;  %1494 = vmatpush3.bf16.msra.mxu1 %v1493_v12  ;;  %1345 = vmatprep.mubr.msk.f32.mxu1 %vm1670_vm3, %v1666_v0  ;;  %v1318_v0 = vld [vmem:[%s1934_s5] ss:$0 sm:$0xff] }
 0xeba   :  { %1495 = vmatprep.subr.bf16.mxu1 %v1669_v11 }
 0xf8b   :  { %v1009_v28 = vpop.f32.mrb[6].mxu1 }
 0xf8c   :  { %v1011_v29 = vpop.f32.mrb[7].mxu1 }
 0xf8d   :  { %v1016_v30 = vcombine.low %v1009_v28, %v1011_v29 }
 0xf8f   :  { %v1023_v31 = vrot.slane %v1016_v30, %v1804_v63 }
 0xf91   :  { %v1030_v32 = vrot.slane %v1023_v31, %v1804_v63 }
 0xf93   :  { %v1032_v9 = vadd.f32 %v1030_v32, %v939_v33 }
 0xf95   :  { %v1313_v34 = vmul.f32 -1.442695, %v1032_v9 }
 0xf97   :  { %1553 = vpow2.f32 %v1313_v34 }
 0xfa1   :  { %v1554_v36 = vpop.eup %1553 }
 0xfa2   :  { %v1036_v37 = vadd.f32 1.0, %v1554_v36 }
 0xfa4   :  { %1555 = vrcp.f32 %v1036_v37 }
 0xfae   :  { %v1556_v38 = vpop.eup %1555 }
 0xfaf   :  { %1040 = vrot.lane.b32.xlu0 %v1556_v38, %s1668_s3  ;;  %v1046_v46 = vmul.f32 %v1556_v38, %v927_v21  ;;  %v1054_v51 = vrot.slane %v1556_v38, 1 }
0x1021   :  { %v1041_v39 = vpop.permute.xlu0 %1040 }
0x1022   :  { %v1042_v40 = vrot.slane %v1041_v39, 1 }
0x1024   :  { %v1044_v41 = vmul.f32 2.0, %v1042_v40 }
0x1026   :  { %v1314_v42 = vadd.f32 -1.0, %v1044_v41 }
0x1028   :  { %v1047_v45 = vmul.f32 %v1556_v38, %v1314_v42 }
0x102a   :  { %1049 = vrot.lane.b32.xlu1 %v1047_v45, %s1668_s3 }
0x109c   :  { %v1050_v47 = vpop.permute.xlu1 %1049 }
0x109d   :  { %v1052_v49 = vadd.f32 %v1050_v47, %v1046_v46 }
0x109f   :  { %1557 = vtanh.f32 %v1052_v49 }
0x10a9   :  { %v1558_v50 = vpop.eup %1557 }
0x10aa   :  { %1057 = vrot.lane.b32.xlu0 %v1558_v50, %s1668_s3 }
0x111c   :  { %v1058_v52 = vpop.permute.xlu0 %1057 }
0x111d   :  { %v1060_v53 = vmul.f32 %v1058_v52, %v1054_v51 }
0x111f   :  { %1061 = vst.msk [vmem:[#allocation3 + $0x6] sm:$0x1] %vm309_vm1, %v1060_v53  ;;  %1315 = vmatmul.mubr.msk.f32.vlgmr.msra.gmra.mrb[8].mxu0 %vm94_vm0, %v1060_v53 }
0x1120   :  { %1062 = vst.msk [vmem:[#allocation3 + $0x1] sm:$0x1] %vm311_vm2, %v1060_v53 }
0x11f2   :  { %v1134_v54 = vpop.f32.mrb[8].mxu0 }
0x11f3   :  { %v1136_v55 = vpop.f32.mrb[9].mxu0 }
0x11f4   :  { %v1141_v56 = vcombine.low %v1134_v54, %v1136_v55 }
0x11f6   :  { %v1148_v57 = vrot.slane %v1141_v56, %v1804_v63 }
0x11f8   :  { %v1155_v58 = vrot.slane %v1148_v57, %v1804_v63  ;;  %v1191_v63 = vld [vmem:[#allocation9 + $0x10] sm:$0xff] }
0x11f9   :  { %v1496_v13 = vpack.c.bf16 %v1192_v17, %v1191_v63 }
0x11fa   :  { %v1157_v60 = vadd.f32 %v1155_v58, %v1064_v59 }
0x11fb   :  { %1497 = vmatpush3.bf16.msra.mxu1 %v1496_v13 }
0x11fc   :  { %v1316_v61 = vmul.f32 -1.442695, %v1157_v60  ;;  %1498 = vmatprep.subr.bf16.mxu1 %v1669_v11 }
0x11fe   :  { %1559 = vpow2.f32 %v1316_v61 }
0x11ff   :  { %1500 = vmatpush3.bf16.msra.mxu1 %v1499_v44 }
0x1200   :  { %1501 = vmatprep.subr.bf16.mxu1 %v1669_v11 }
0x1203   :  { %1503 = vmatpush3.bf16.msra.mxu1 %v1502_v16 }
0x1208   :  { %v1560_v62 = vpop.eup %1559 }
0x1209   :  { %v1161_v1 = vadd.f32 1.0, %v1560_v62 }
0x120b   :  { %1561 = vrcp.f32 %v1161_v1 }
0x1215   :  { %v1562_v2 = vpop.eup %1561 }
0x1216   :  { %1165 = vrot.lane.b32.xlu1 %v1562_v2, %s1668_s3  ;;  %v1171_v14 = vmul.f32 %v1562_v2, %v1052_v49  ;;  %v1179_v19 = vrot.slane %v1562_v2, 1 }
0x1288   :  { %v1166_v3 = vpop.permute.xlu1 %1165 }
0x1289   :  { %v1167_v4 = vrot.slane %v1166_v3, 1 }
0x128b   :  { %v1169_v5 = vmul.f32 2.0, %v1167_v4 }
0x128d   :  { %v1317_v6 = vadd.f32 -1.0, %v1169_v5 }
0x128f   :  { %v1172_v7 = vmul.f32 %v1562_v2, %v1317_v6 }
0x1291   :  { %1174 = vrot.lane.b32.xlu0 %v1172_v7, %s1668_s3 }
0x1303   :  { %v1175_v22 = vpop.permute.xlu0 %1174 }
0x1304   :  { %v1177_v27 = vadd.f32 %v1175_v22, %v1171_v14 }
0x1306   :  { %1563 = vtanh.f32 %v1177_v27 }
0x1310   :  { %v1564_v18 = vpop.eup %1563 }
0x1311   :  { %1182 = vrot.lane.b32.xlu1 %v1564_v18, %s1668_s3 }
0x1383   :  { %v1183_v20 = vpop.permute.xlu1 %1182 }
0x1384   :  { %v1185_v21 = vmul.f32 %v1183_v20, %v1179_v19 }
0x1386   :  { %1186 = vst.msk [vmem:[#allocation3 + $0x7] sm:$0x1] %vm309_vm1, %v1185_v21 }
0x1387   :  { %1187 = vst.msk [vmem:[#allocation3] sm:$0x1] %vm311_vm2, %v1185_v21 }
0x138e   :  { %v1188_v23 = vld [vmem:[#allocation3] sm:$0xff] }
0x138f   :  { %1346 = vmatmul.mubr.msk.f32.vlgmr.msra.gmra.mrb[8].mxu1 %vm94_vm0, %v1188_v23 }
0x1462   :  { %v1273_v24 = vpop.f32.mrb[8].mxu1 }
0x1463   :  { %v1274_v25 = vadd.f32 %v1318_v0, %v1273_v24  ;;  %v1347_v26 = vpop.f32.mrb[9].mxu1 }
0x1465   :  { %1277 = vst [vmem:[#allocation10] sm:$0xff] %v1274_v25 }
0x1466   :  { %1642 = shalt.err (!%p1639_p0)
}
0x1467   :  { %s1643_s20 = scalar_lea.hbm %s1935_s6, 128 }
0x1468   :  { %p1644_p1 = scmp.ne.s32.totalorder %s1935_s6, %s1643_s20  ;;  %p1647_p2 = scmp.lt.u32.totalorder %s1643_s20, %s1935_s6 }
0x146a   :  { %p1649_p3 = pnand %p1647_p2, %p1644_p1 }
0x146c   :  { %1652 = shalt.err (!%p1649_p3)
}
0x146d   :  { %1287 = dma.vmem_to_hbm [thread:$0]  %s1285_s16, 128, %s1935_s6, [#allocation6]  }
0x146e   :  { %1657 = dma.done.wait [#allocation6], 128  }
0x146f   :  { %1658 = vsyncadd [#allocation6], 4294967168 }
0x1470   :  { %1291 = vsyncpa [#allocation5], 1 }
0x1471   :  { %1292 = vsyncpa [#allocation8], 1 }
0x1472   :  { %1293 = vsyncpa [#allocation6], 1 }

</bundles_post_ra>
